<compile_context>
chip_gen: v5e
topology: v5e:2x2
jax: 0.10.0
libtpu: 0.0.40
codegen_flags: <defaults>
</compile_context>

<pallas_src>
import math

import jax
import jax.numpy as jnp
from jax.experimental import pallas as pl
from jax.experimental.pallas import tpu as pltpu

D_MODEL = 512        # spec value (keeps the last dim lane-dense: 512 = 4 * 128)
VOCAB_SIZE = 100     # spec value
MAX_LEN = 16
SEQ_LEN = 8
BATCH = 2
DROP_PROB = 0.1      # eval-mode dropout == identity


# ---------------------------------------------------------------------------
# Kernel: per-tile HBM row gather (manual DMA) + positional-encoding add
# ---------------------------------------------------------------------------
def embedding_gather_kernel(ids_ref, pe_ref, emb_hbm, out_ref, gather_buf, sem):
    """One grid step = one tile of `tm` consecutive tokens.

    ids_ref    : SMEM (B*S,) int32   token ids (scalar prefetch)
    pe_ref     : VMEM (tm, D) f32    positional-encoding rows for this tile
    emb_hbm    : HBM  (V, D)  f32    embedding table (never VMEM-resident)
    out_ref    : VMEM (tm, D) f32    output tile
    gather_buf : VMEM (tm, D) f32    scratch the gathered rows land in
    sem        : DMA sems (tm,)      one per in-flight row DMA
    """
    t = pl.program_id(0)
    tm = gather_buf.shape[0]

    # Issue every row-gather DMA up front so the HBM latencies overlap
    # (per-row semaphore array), then wait for all of them.
    copies = []
    for j in range(tm):                      # tm is small & static -> full unroll
        tok = ids_ref[t * tm + j]
        cp = pltpu.make_async_copy(
            emb_hbm.at[pl.ds(tok, 1), :],
            gather_buf.at[pl.ds(j, 1), :],
            sem.at[j],
        )
        cp.start()
        copies.append(cp)
    for cp in copies:
        cp.wait()

    # Fused positional-encoding add; single lane-dense (tm, 512) store.
    # Dropout is identity in eval mode.
    out_ref[...] = gather_buf[...] + pe_ref[...]


def _tokens_per_tile(seq_len: int) -> int:
    # Largest tile (<= 512 rows) that divides the sequence length, so the
    # positional-encoding tiles stay aligned with the token tiles.
    for cand in (512, 256, 128, 64, 32, 16, 8):
        if seq_len % cand == 0:
            return cand
    return seq_len


@jax.jit
def transformer_embedding(ids, emb_table, pe):
    """ids: (B, S) int32; emb_table: (V, D) f32; pe: (max_len, D) f32."""
    B, S = ids.shape
    V, D = emb_table.shape
    tm = _tokens_per_tile(S)
    n_tiles = (B * S) // tm
    pos_tiles = S // tm

    ids_flat = ids.astype(jnp.int32).reshape(B * S)
    pe_slice = pe[:S, :]                     # == positional_encoding[:x.size(1), :]

    out_flat = pl.pallas_call(
        embedding_gather_kernel,
        out_shape=jax.ShapeDtypeStruct((B * S, D), emb_table.dtype),
        grid_spec=pltpu.PrefetchScalarGridSpec(
            num_scalar_prefetch=1,           # ids -> SMEM, visible to index_maps too
            grid=(n_tiles,),
            in_specs=[
                # PE rows for this tile's positions (tm divides S by construction).
                pl.BlockSpec((tm, D), lambda t, ids: (t % pos_tiles, 0)),
                # Embedding table stays in HBM; rows are DMA'd on demand.
                pl.BlockSpec(memory_space=pl.ANY),
            ],
            out_specs=pl.BlockSpec((tm, D), lambda t, ids: (t, 0)),
            scratch_shapes=[
                pltpu.VMEM((tm, D), emb_table.dtype),
                pltpu.SemaphoreType.DMA((tm,)),
            ],
        ),
        compiler_params=pltpu.CompilerParams(
            # Token tiles are independent -> megacore-shardable (v7x: 2 TCs).
            dimension_semantics=("parallel",),
        ),
    )(ids_flat, pe_slice, emb_table)
    return out_flat.reshape(B, S, D)


# ---------------------------------------------------------------------------
# Sinusoidal positional encoding (same math as the PyTorch __init__)
# ---------------------------------------------------------------------------
def get_positional_encoding(max_len, d_model):
    position = jnp.arange(max_len, dtype=jnp.float32)[:, None]            # (L, 1)
    div_term = jnp.exp(jnp.arange(0, d_model, 2, dtype=jnp.float32)
                       * (-math.log(10000.0) / d_model))                  # (D/2,)
    angles = position * div_term                                          # (L, D/2)
    pe = jnp.zeros((max_len, d_model), jnp.float32)
    pe = pe.at[:, 0::2].set(jnp.sin(angles))
    pe = pe.at[:, 1::2].set(jnp.cos(angles))
    return pe


if __name__ == "__main__":
    key = jax.random.PRNGKey(0)
    k_ids, k_emb = jax.random.split(key, 2)

    ids = jax.random.randint(k_ids, (BATCH, SEQ_LEN), 0, VOCAB_SIZE, jnp.int32)
    emb_table = 0.05 * jax.random.normal(k_emb, (VOCAB_SIZE, D_MODEL), jnp.float32)
    pe = get_positional_encoding(MAX_LEN, D_MODEL)

    out = transformer_embedding(ids, emb_table, pe)
    out = jax.block_until_ready(out)

    # Reference (plain JAX, same math as the PyTorch forward in eval mode).
    ref = emb_table[ids] + pe[:SEQ_LEN][None, :, :]

    assert out.shape == (BATCH, SEQ_LEN, D_MODEL)
    assert bool(jnp.all(jnp.isfinite(out)))
    assert jnp.allclose(out, ref, atol=1e-5, rtol=1e-5)
    print("KERNEL_OK")
</pallas_src>

<mosaic_0001>
module attributes {stable_mosaic.version = 11 : i64} {
  func.func @embedding_gather_kernel(%arg0: i32, %arg1: memref<16xi32, #tpu.memory_space<smem>>, %arg2: memref<8x512xf32, #tpu.memory_space<vmem>>, %arg3: memref<100x512xf32, #tpu.memory_space<any>>, %arg4: memref<8x512xf32, #tpu.memory_space<vmem>>, %arg5: memref<8x512xf32, #tpu.memory_space<vmem>>, %arg6: memref<8x!tpu.dma_semaphore, #tpu.memory_space<semaphore_mem>>) attributes {dimension_semantics = [#tpu.dimension_semantics<parallel>], iteration_bounds = array<i64: 2>, scalar_prefetch = 1 : i64, scratch_operands = 2 : i64, tpu.core_type = #tpu.core_type<tc>, window_params = [{transform_indices = @transform_0, window_bounds = array<i64: 8, 512>}, {}, {transform_indices = @transform_2, window_bounds = array<i64: 8, 512>}]} {
    %c8_i32 = arith.constant 8 : i32
    %0 = arith.muli %arg0, %c8_i32 : i32
    %c0_i32 = arith.constant 0 : i32
    %1 = arith.addi %0, %c0_i32 : i32
    %2 = arith.index_cast %1 : i32 to index
    %3 = memref.load %arg1[%2] : memref<16xi32, #tpu.memory_space<smem>>
    %c0_i32_0 = arith.constant 0 : i32
    %c0_i32_1 = arith.constant 0 : i32
    %4 = tpu.memref_slice %arg3[%3, %c0_i32_1] : memref<100x512xf32, #tpu.memory_space<any>> -> memref<1x512xf32, #tpu.memory_space<any>>
    %c0_i32_2 = arith.constant 0 : i32
    %c0_i32_3 = arith.constant 0 : i32
    %5 = tpu.memref_slice %arg5[%c0_i32_2, %c0_i32_3] : memref<8x512xf32, #tpu.memory_space<vmem>> -> memref<1x512xf32, #tpu.memory_space<vmem>>
    %6 = tpu.memref_slice %arg6[%c0_i32_0] : memref<8x!tpu.dma_semaphore, #tpu.memory_space<semaphore_mem>> -> memref<1x!tpu.dma_semaphore, #tpu.memory_space<semaphore_mem>>
    %7 = tpu.memref_squeeze %6 : memref<1x!tpu.dma_semaphore, #tpu.memory_space<semaphore_mem>> -> memref<!tpu.dma_semaphore, #tpu.memory_space<semaphore_mem>>
    tpu.enqueue_dma source(%4 : memref<1x512xf32, #tpu.memory_space<any>>) target(%5 : memref<1x512xf32, #tpu.memory_space<vmem>>) target_semaphore(%7 : memref<!tpu.dma_semaphore, #tpu.memory_space<semaphore_mem>>)
    %c8_i32_4 = arith.constant 8 : i32
    %8 = arith.muli %arg0, %c8_i32_4 : i32
    %c1_i32 = arith.constant 1 : i32
    %9 = arith.addi %8, %c1_i32 : i32
    %10 = arith.index_cast %9 : i32 to index
    %11 = memref.load %arg1[%10] : memref<16xi32, #tpu.memory_space<smem>>
    %c1_i32_5 = arith.constant 1 : i32
    %c0_i32_6 = arith.constant 0 : i32
    %12 = tpu.memref_slice %arg3[%11, %c0_i32_6] : memref<100x512xf32, #tpu.memory_space<any>> -> memref<1x512xf32, #tpu.memory_space<any>>
    %c1_i32_7 = arith.constant 1 : i32
    %c0_i32_8 = arith.constant 0 : i32
    %13 = tpu.memref_slice %arg5[%c1_i32_7, %c0_i32_8] : memref<8x512xf32, #tpu.memory_space<vmem>> -> memref<1x512xf32, #tpu.memory_space<vmem>>
    %14 = tpu.memref_slice %arg6[%c1_i32_5] : memref<8x!tpu.dma_semaphore, #tpu.memory_space<semaphore_mem>> -> memref<1x!tpu.dma_semaphore, #tpu.memory_space<semaphore_mem>>
    %15 = tpu.memref_squeeze %14 : memref<1x!tpu.dma_semaphore, #tpu.memory_space<semaphore_mem>> -> memref<!tpu.dma_semaphore, #tpu.memory_space<semaphore_mem>>
    tpu.enqueue_dma source(%12 : memref<1x512xf32, #tpu.memory_space<any>>) target(%13 : memref<1x512xf32, #tpu.memory_space<vmem>>) target_semaphore(%15 : memref<!tpu.dma_semaphore, #tpu.memory_space<semaphore_mem>>)
    %c8_i32_9 = arith.constant 8 : i32
    %16 = arith.muli %arg0, %c8_i32_9 : i32
    %c2_i32 = arith.constant 2 : i32
    %17 = arith.addi %16, %c2_i32 : i32
    %18 = arith.index_cast %17 : i32 to index
    %19 = memref.load %arg1[%18] : memref<16xi32, #tpu.memory_space<smem>>
    %c2_i32_10 = arith.constant 2 : i32
    %c0_i32_11 = arith.constant 0 : i32
    %20 = tpu.memref_slice %arg3[%19, %c0_i32_11] : memref<100x512xf32, #tpu.memory_space<any>> -> memref<1x512xf32, #tpu.memory_space<any>>
    %c2_i32_12 = arith.constant 2 : i32
    %c0_i32_13 = arith.constant 0 : i32
    %21 = tpu.memref_slice %arg5[%c2_i32_12, %c0_i32_13] : memref<8x512xf32, #tpu.memory_space<vmem>> -> memref<1x512xf32, #tpu.memory_space<vmem>>
    %22 = tpu.memref_slice %arg6[%c2_i32_10] : memref<8x!tpu.dma_semaphore, #tpu.memory_space<semaphore_mem>> -> memref<1x!tpu.dma_semaphore, #tpu.memory_space<semaphore_mem>>
    %23 = tpu.memref_squeeze %22 : memref<1x!tpu.dma_semaphore, #tpu.memory_space<semaphore_mem>> -> memref<!tpu.dma_semaphore, #tpu.memory_space<semaphore_mem>>
    tpu.enqueue_dma source(%20 : memref<1x512xf32, #tpu.memory_space<any>>) target(%21 : memref<1x512xf32, #tpu.memory_space<vmem>>) target_semaphore(%23 : memref<!tpu.dma_semaphore, #tpu.memory_space<semaphore_mem>>)
    %c8_i32_14 = arith.constant 8 : i32
    %24 = arith.muli %arg0, %c8_i32_14 : i32
    %c3_i32 = arith.constant 3 : i32
    %25 = arith.addi %24, %c3_i32 : i32
    %26 = arith.index_cast %25 : i32 to index
    %27 = memref.load %arg1[%26] : memref<16xi32, #tpu.memory_space<smem>>
    %c3_i32_15 = arith.constant 3 : i32
    %c0_i32_16 = arith.constant 0 : i32
    %28 = tpu.memref_slice %arg3[%27, %c0_i32_16] : memref<100x512xf32, #tpu.memory_space<any>> -> memref<1x512xf32, #tpu.memory_space<any>>
    %c3_i32_17 = arith.constant 3 : i32
    %c0_i32_18 = arith.constant 0 : i32
    %29 = tpu.memref_slice %arg5[%c3_i32_17, %c0_i32_18] : memref<8x512xf32, #tpu.memory_space<vmem>> -> memref<1x512xf32, #tpu.memory_space<vmem>>
    %30 = tpu.memref_slice %arg6[%c3_i32_15] : memref<8x!tpu.dma_semaphore, #tpu.memory_space<semaphore_mem>> -> memref<1x!tpu.dma_semaphore, #tpu.memory_space<semaphore_mem>>
    %31 = tpu.memref_squeeze %30 : memref<1x!tpu.dma_semaphore, #tpu.memory_space<semaphore_mem>> -> memref<!tpu.dma_semaphore, #tpu.memory_space<semaphore_mem>>
    tpu.enqueue_dma source(%28 : memref<1x512xf32, #tpu.memory_space<any>>) target(%29 : memref<1x512xf32, #tpu.memory_space<vmem>>) target_semaphore(%31 : memref<!tpu.dma_semaphore, #tpu.memory_space<semaphore_mem>>)
    %c8_i32_19 = arith.constant 8 : i32
    %32 = arith.muli %arg0, %c8_i32_19 : i32
    %c4_i32 = arith.constant 4 : i32
    %33 = arith.addi %32, %c4_i32 : i32
    %34 = arith.index_cast %33 : i32 to index
    %35 = memref.load %arg1[%34] : memref<16xi32, #tpu.memory_space<smem>>
    %c4_i32_20 = arith.constant 4 : i32
    %c0_i32_21 = arith.constant 0 : i32
    %36 = tpu.memref_slice %arg3[%35, %c0_i32_21] : memref<100x512xf32, #tpu.memory_space<any>> -> memref<1x512xf32, #tpu.memory_space<any>>
    %c4_i32_22 = arith.constant 4 : i32
    %c0_i32_23 = arith.constant 0 : i32
    %37 = tpu.memref_slice %arg5[%c4_i32_22, %c0_i32_23] : memref<8x512xf32, #tpu.memory_space<vmem>> -> memref<1x512xf32, #tpu.memory_space<vmem>>
    %38 = tpu.memref_slice %arg6[%c4_i32_20] : memref<8x!tpu.dma_semaphore, #tpu.memory_space<semaphore_mem>> -> memref<1x!tpu.dma_semaphore, #tpu.memory_space<semaphore_mem>>
    %39 = tpu.memref_squeeze %38 : memref<1x!tpu.dma_semaphore, #tpu.memory_space<semaphore_mem>> -> memref<!tpu.dma_semaphore, #tpu.memory_space<semaphore_mem>>
    tpu.enqueue_dma source(%36 : memref<1x512xf32, #tpu.memory_space<any>>) target(%37 : memref<1x512xf32, #tpu.memory_space<vmem>>) target_semaphore(%39 : memref<!tpu.dma_semaphore, #tpu.memory_space<semaphore_mem>>)
    %c8_i32_24 = arith.constant 8 : i32
    %40 = arith.muli %arg0, %c8_i32_24 : i32
    %c5_i32 = arith.constant 5 : i32
    %41 = arith.addi %40, %c5_i32 : i32
    %42 = arith.index_cast %41 : i32 to index
    %43 = memref.load %arg1[%42] : memref<16xi32, #tpu.memory_space<smem>>
    %c5_i32_25 = arith.constant 5 : i32
    %c0_i32_26 = arith.constant 0 : i32
    %44 = tpu.memref_slice %arg3[%43, %c0_i32_26] : memref<100x512xf32, #tpu.memory_space<any>> -> memref<1x512xf32, #tpu.memory_space<any>>
    %c5_i32_27 = arith.constant 5 : i32
    %c0_i32_28 = arith.constant 0 : i32
    %45 = tpu.memref_slice %arg5[%c5_i32_27, %c0_i32_28] : memref<8x512xf32, #tpu.memory_space<vmem>> -> memref<1x512xf32, #tpu.memory_space<vmem>>
    %46 = tpu.memref_slice %arg6[%c5_i32_25] : memref<8x!tpu.dma_semaphore, #tpu.memory_space<semaphore_mem>> -> memref<1x!tpu.dma_semaphore, #tpu.memory_space<semaphore_mem>>
    %47 = tpu.memref_squeeze %46 : memref<1x!tpu.dma_semaphore, #tpu.memory_space<semaphore_mem>> -> memref<!tpu.dma_semaphore, #tpu.memory_space<semaphore_mem>>
    tpu.enqueue_dma source(%44 : memref<1x512xf32, #tpu.memory_space<any>>) target(%45 : memref<1x512xf32, #tpu.memory_space<vmem>>) target_semaphore(%47 : memref<!tpu.dma_semaphore, #tpu.memory_space<semaphore_mem>>)
    %c8_i32_29 = arith.constant 8 : i32
    %48 = arith.muli %arg0, %c8_i32_29 : i32
    %c6_i32 = arith.constant 6 : i32
    %49 = arith.addi %48, %c6_i32 : i32
    %50 = arith.index_cast %49 : i32 to index
    %51 = memref.load %arg1[%50] : memref<16xi32, #tpu.memory_space<smem>>
    %c6_i32_30 = arith.constant 6 : i32
    %c0_i32_31 = arith.constant 0 : i32
    %52 = tpu.memref_slice %arg3[%51, %c0_i32_31] : memref<100x512xf32, #tpu.memory_space<any>> -> memref<1x512xf32, #tpu.memory_space<any>>
    %c6_i32_32 = arith.constant 6 : i32
    %c0_i32_33 = arith.constant 0 : i32
    %53 = tpu.memref_slice %arg5[%c6_i32_32, %c0_i32_33] : memref<8x512xf32, #tpu.memory_space<vmem>> -> memref<1x512xf32, #tpu.memory_space<vmem>>
    %54 = tpu.memref_slice %arg6[%c6_i32_30] : memref<8x!tpu.dma_semaphore, #tpu.memory_space<semaphore_mem>> -> memref<1x!tpu.dma_semaphore, #tpu.memory_space<semaphore_mem>>
    %55 = tpu.memref_squeeze %54 : memref<1x!tpu.dma_semaphore, #tpu.memory_space<semaphore_mem>> -> memref<!tpu.dma_semaphore, #tpu.memory_space<semaphore_mem>>
    tpu.enqueue_dma source(%52 : memref<1x512xf32, #tpu.memory_space<any>>) target(%53 : memref<1x512xf32, #tpu.memory_space<vmem>>) target_semaphore(%55 : memref<!tpu.dma_semaphore, #tpu.memory_space<semaphore_mem>>)
    %c8_i32_34 = arith.constant 8 : i32
    %56 = arith.muli %arg0, %c8_i32_34 : i32
    %c7_i32 = arith.constant 7 : i32
    %57 = arith.addi %56, %c7_i32 : i32
    %58 = arith.index_cast %57 : i32 to index
    %59 = memref.load %arg1[%58] : memref<16xi32, #tpu.memory_space<smem>>
    %c7_i32_35 = arith.constant 7 : i32
    %c0_i32_36 = arith.constant 0 : i32
    %60 = tpu.memref_slice %arg3[%59, %c0_i32_36] : memref<100x512xf32, #tpu.memory_space<any>> -> memref<1x512xf32, #tpu.memory_space<any>>
    %c7_i32_37 = arith.constant 7 : i32
    %c0_i32_38 = arith.constant 0 : i32
    %61 = tpu.memref_slice %arg5[%c7_i32_37, %c0_i32_38] : memref<8x512xf32, #tpu.memory_space<vmem>> -> memref<1x512xf32, #tpu.memory_space<vmem>>
    %62 = tpu.memref_slice %arg6[%c7_i32_35] : memref<8x!tpu.dma_semaphore, #tpu.memory_space<semaphore_mem>> -> memref<1x!tpu.dma_semaphore, #tpu.memory_space<semaphore_mem>>
    %63 = tpu.memref_squeeze %62 : memref<1x!tpu.dma_semaphore, #tpu.memory_space<semaphore_mem>> -> memref<!tpu.dma_semaphore, #tpu.memory_space<semaphore_mem>>
    tpu.enqueue_dma source(%60 : memref<1x512xf32, #tpu.memory_space<any>>) target(%61 : memref<1x512xf32, #tpu.memory_space<vmem>>) target_semaphore(%63 : memref<!tpu.dma_semaphore, #tpu.memory_space<semaphore_mem>>)
    %c0_i32_39 = arith.constant 0 : i32
    %c0_i32_40 = arith.constant 0 : i32
    %64 = tpu.memref_slice %arg3[%3, %c0_i32_40] : memref<100x512xf32, #tpu.memory_space<any>> -> memref<1x512xf32, #tpu.memory_space<any>>
    %c0_i32_41 = arith.constant 0 : i32
    %c0_i32_42 = arith.constant 0 : i32
    %65 = tpu.memref_slice %arg5[%c0_i32_41, %c0_i32_42] : memref<8x512xf32, #tpu.memory_space<vmem>> -> memref<1x512xf32, #tpu.memory_space<vmem>>
    %66 = tpu.memref_slice %arg6[%c0_i32_39] : memref<8x!tpu.dma_semaphore, #tpu.memory_space<semaphore_mem>> -> memref<1x!tpu.dma_semaphore, #tpu.memory_space<semaphore_mem>>
    %67 = tpu.memref_squeeze %66 : memref<1x!tpu.dma_semaphore, #tpu.memory_space<semaphore_mem>> -> memref<!tpu.dma_semaphore, #tpu.memory_space<semaphore_mem>>
    tpu.wait_dma2 semaphore(%67 : memref<!tpu.dma_semaphore, #tpu.memory_space<semaphore_mem>>) src(%64 : memref<1x512xf32, #tpu.memory_space<any>>) dst(%65 : memref<1x512xf32, #tpu.memory_space<vmem>>)
    %c1_i32_43 = arith.constant 1 : i32
    %c0_i32_44 = arith.constant 0 : i32
    %68 = tpu.memref_slice %arg3[%11, %c0_i32_44] : memref<100x512xf32, #tpu.memory_space<any>> -> memref<1x512xf32, #tpu.memory_space<any>>
    %c1_i32_45 = arith.constant 1 : i32
    %c0_i32_46 = arith.constant 0 : i32
    %69 = tpu.memref_slice %arg5[%c1_i32_45, %c0_i32_46] : memref<8x512xf32, #tpu.memory_space<vmem>> -> memref<1x512xf32, #tpu.memory_space<vmem>>
    %70 = tpu.memref_slice %arg6[%c1_i32_43] : memref<8x!tpu.dma_semaphore, #tpu.memory_space<semaphore_mem>> -> memref<1x!tpu.dma_semaphore, #tpu.memory_space<semaphore_mem>>
    %71 = tpu.memref_squeeze %70 : memref<1x!tpu.dma_semaphore, #tpu.memory_space<semaphore_mem>> -> memref<!tpu.dma_semaphore, #tpu.memory_space<semaphore_mem>>
    tpu.wait_dma2 semaphore(%71 : memref<!tpu.dma_semaphore, #tpu.memory_space<semaphore_mem>>) src(%68 : memref<1x512xf32, #tpu.memory_space<any>>) dst(%69 : memref<1x512xf32, #tpu.memory_space<vmem>>)
    %c2_i32_47 = arith.constant 2 : i32
    %c0_i32_48 = arith.constant 0 : i32
    %72 = tpu.memref_slice %arg3[%19, %c0_i32_48] : memref<100x512xf32, #tpu.memory_space<any>> -> memref<1x512xf32, #tpu.memory_space<any>>
    %c2_i32_49 = arith.constant 2 : i32
    %c0_i32_50 = arith.constant 0 : i32
    %73 = tpu.memref_slice %arg5[%c2_i32_49, %c0_i32_50] : memref<8x512xf32, #tpu.memory_space<vmem>> -> memref<1x512xf32, #tpu.memory_space<vmem>>
    %74 = tpu.memref_slice %arg6[%c2_i32_47] : memref<8x!tpu.dma_semaphore, #tpu.memory_space<semaphore_mem>> -> memref<1x!tpu.dma_semaphore, #tpu.memory_space<semaphore_mem>>
    %75 = tpu.memref_squeeze %74 : memref<1x!tpu.dma_semaphore, #tpu.memory_space<semaphore_mem>> -> memref<!tpu.dma_semaphore, #tpu.memory_space<semaphore_mem>>
    tpu.wait_dma2 semaphore(%75 : memref<!tpu.dma_semaphore, #tpu.memory_space<semaphore_mem>>) src(%72 : memref<1x512xf32, #tpu.memory_space<any>>) dst(%73 : memref<1x512xf32, #tpu.memory_space<vmem>>)
    %c3_i32_51 = arith.constant 3 : i32
    %c0_i32_52 = arith.constant 0 : i32
    %76 = tpu.memref_slice %arg3[%27, %c0_i32_52] : memref<100x512xf32, #tpu.memory_space<any>> -> memref<1x512xf32, #tpu.memory_space<any>>
    %c3_i32_53 = arith.constant 3 : i32
    %c0_i32_54 = arith.constant 0 : i32
    %77 = tpu.memref_slice %arg5[%c3_i32_53, %c0_i32_54] : memref<8x512xf32, #tpu.memory_space<vmem>> -> memref<1x512xf32, #tpu.memory_space<vmem>>
    %78 = tpu.memref_slice %arg6[%c3_i32_51] : memref<8x!tpu.dma_semaphore, #tpu.memory_space<semaphore_mem>> -> memref<1x!tpu.dma_semaphore, #tpu.memory_space<semaphore_mem>>
    %79 = tpu.memref_squeeze %78 : memref<1x!tpu.dma_semaphore, #tpu.memory_space<semaphore_mem>> -> memref<!tpu.dma_semaphore, #tpu.memory_space<semaphore_mem>>
    tpu.wait_dma2 semaphore(%79 : memref<!tpu.dma_semaphore, #tpu.memory_space<semaphore_mem>>) src(%76 : memref<1x512xf32, #tpu.memory_space<any>>) dst(%77 : memref<1x512xf32, #tpu.memory_space<vmem>>)
    %c4_i32_55 = arith.constant 4 : i32
    %c0_i32_56 = arith.constant 0 : i32
    %80 = tpu.memref_slice %arg3[%35, %c0_i32_56] : memref<100x512xf32, #tpu.memory_space<any>> -> memref<1x512xf32, #tpu.memory_space<any>>
    %c4_i32_57 = arith.constant 4 : i32
    %c0_i32_58 = arith.constant 0 : i32
    %81 = tpu.memref_slice %arg5[%c4_i32_57, %c0_i32_58] : memref<8x512xf32, #tpu.memory_space<vmem>> -> memref<1x512xf32, #tpu.memory_space<vmem>>
    %82 = tpu.memref_slice %arg6[%c4_i32_55] : memref<8x!tpu.dma_semaphore, #tpu.memory_space<semaphore_mem>> -> memref<1x!tpu.dma_semaphore, #tpu.memory_space<semaphore_mem>>
    %83 = tpu.memref_squeeze %82 : memref<1x!tpu.dma_semaphore, #tpu.memory_space<semaphore_mem>> -> memref<!tpu.dma_semaphore, #tpu.memory_space<semaphore_mem>>
    tpu.wait_dma2 semaphore(%83 : memref<!tpu.dma_semaphore, #tpu.memory_space<semaphore_mem>>) src(%80 : memref<1x512xf32, #tpu.memory_space<any>>) dst(%81 : memref<1x512xf32, #tpu.memory_space<vmem>>)
    %c5_i32_59 = arith.constant 5 : i32
    %c0_i32_60 = arith.constant 0 : i32
    %84 = tpu.memref_slice %arg3[%43, %c0_i32_60] : memref<100x512xf32, #tpu.memory_space<any>> -> memref<1x512xf32, #tpu.memory_space<any>>
    %c5_i32_61 = arith.constant 5 : i32
    %c0_i32_62 = arith.constant 0 : i32
    %85 = tpu.memref_slice %arg5[%c5_i32_61, %c0_i32_62] : memref<8x512xf32, #tpu.memory_space<vmem>> -> memref<1x512xf32, #tpu.memory_space<vmem>>
    %86 = tpu.memref_slice %arg6[%c5_i32_59] : memref<8x!tpu.dma_semaphore, #tpu.memory_space<semaphore_mem>> -> memref<1x!tpu.dma_semaphore, #tpu.memory_space<semaphore_mem>>
    %87 = tpu.memref_squeeze %86 : memref<1x!tpu.dma_semaphore, #tpu.memory_space<semaphore_mem>> -> memref<!tpu.dma_semaphore, #tpu.memory_space<semaphore_mem>>
    tpu.wait_dma2 semaphore(%87 : memref<!tpu.dma_semaphore, #tpu.memory_space<semaphore_mem>>) src(%84 : memref<1x512xf32, #tpu.memory_space<any>>) dst(%85 : memref<1x512xf32, #tpu.memory_space<vmem>>)
    %c6_i32_63 = arith.constant 6 : i32
    %c0_i32_64 = arith.constant 0 : i32
    %88 = tpu.memref_slice %arg3[%51, %c0_i32_64] : memref<100x512xf32, #tpu.memory_space<any>> -> memref<1x512xf32, #tpu.memory_space<any>>
    %c6_i32_65 = arith.constant 6 : i32
    %c0_i32_66 = arith.constant 0 : i32
    %89 = tpu.memref_slice %arg5[%c6_i32_65, %c0_i32_66] : memref<8x512xf32, #tpu.memory_space<vmem>> -> memref<1x512xf32, #tpu.memory_space<vmem>>
    %90 = tpu.memref_slice %arg6[%c6_i32_63] : memref<8x!tpu.dma_semaphore, #tpu.memory_space<semaphore_mem>> -> memref<1x!tpu.dma_semaphore, #tpu.memory_space<semaphore_mem>>
    %91 = tpu.memref_squeeze %90 : memref<1x!tpu.dma_semaphore, #tpu.memory_space<semaphore_mem>> -> memref<!tpu.dma_semaphore, #tpu.memory_space<semaphore_mem>>
    tpu.wait_dma2 semaphore(%91 : memref<!tpu.dma_semaphore, #tpu.memory_space<semaphore_mem>>) src(%88 : memref<1x512xf32, #tpu.memory_space<any>>) dst(%89 : memref<1x512xf32, #tpu.memory_space<vmem>>)
    %c7_i32_67 = arith.constant 7 : i32
    %c0_i32_68 = arith.constant 0 : i32
    %92 = tpu.memref_slice %arg3[%59, %c0_i32_68] : memref<100x512xf32, #tpu.memory_space<any>> -> memref<1x512xf32, #tpu.memory_space<any>>
    %c7_i32_69 = arith.constant 7 : i32
    %c0_i32_70 = arith.constant 0 : i32
    %93 = tpu.memref_slice %arg5[%c7_i32_69, %c0_i32_70] : memref<8x512xf32, #tpu.memory_space<vmem>> -> memref<1x512xf32, #tpu.memory_space<vmem>>
    %94 = tpu.memref_slice %arg6[%c7_i32_67] : memref<8x!tpu.dma_semaphore, #tpu.memory_space<semaphore_mem>> -> memref<1x!tpu.dma_semaphore, #tpu.memory_space<semaphore_mem>>
    %95 = tpu.memref_squeeze %94 : memref<1x!tpu.dma_semaphore, #tpu.memory_space<semaphore_mem>> -> memref<!tpu.dma_semaphore, #tpu.memory_space<semaphore_mem>>
    tpu.wait_dma2 semaphore(%95 : memref<!tpu.dma_semaphore, #tpu.memory_space<semaphore_mem>>) src(%92 : memref<1x512xf32, #tpu.memory_space<any>>) dst(%93 : memref<1x512xf32, #tpu.memory_space<vmem>>)
    %c0 = arith.constant 0 : index
    %c0_71 = arith.constant 0 : index
    %96 = vector.load %arg5[%c0, %c0_71] : memref<8x512xf32, #tpu.memory_space<vmem>>, vector<8x512xf32>
    %c0_72 = arith.constant 0 : index
    %c0_73 = arith.constant 0 : index
    %97 = vector.load %arg2[%c0_72, %c0_73] : memref<8x512xf32, #tpu.memory_space<vmem>>, vector<8x512xf32>
    %98 = arith.addf %96, %97 : vector<8x512xf32>
    %c0_74 = arith.constant 0 : index
    %c0_75 = arith.constant 0 : index
    %99 = vector.load %arg4[%c0_74, %c0_75] : memref<8x512xf32, #tpu.memory_space<vmem>>, vector<8x512xf32>
    tpu.vector_store %arg4[%c0_74, %c0_75], %98 {strides = array<i32>} : memref<8x512xf32, #tpu.memory_space<vmem>>, vector<8x512xf32>,
    return
  }
  func.func @transform_0(%arg0: i32, %arg1: memref<16xi32, #tpu.memory_space<smem>>) -> (i32, i32) {
    %c1_i32 = arith.constant 1 : i32
    %c0_i32 = arith.constant 0 : i32
    %0 = arith.cmpi eq, %c1_i32, %c0_i32 : i32
    %c1_i32_0 = arith.constant 1 : i32
    %1 = arith.select %0, %c1_i32_0, %c1_i32 : i32
    %2 = arith.remsi %arg0, %1 : i32
    %c0_i32_1 = arith.constant 0 : i32
    %3 = arith.cmpi ne, %2, %c0_i32_1 : i32
    %c0_i32_2 = arith.constant 0 : i32
    %4 = arith.cmpi slt, %2, %c0_i32_2 : i32
    %c0_i32_3 = arith.constant 0 : i32
    %5 = arith.cmpi slt, %1, %c0_i32_3 : i32
    %6 = arith.xori %4, %5 : i1
    %7 = arith.andi %6, %3 : i1
    %8 = arith.addi %2, %1 : i32
    %9 = arith.select %7, %8, %2 : i32
    %c0_i32_4 = arith.constant 0 : i32
    %c0_i32_5 = arith.constant 0 : i32
    return %9, %c0_i32_4 : i32, i32
  }
  func.func @transform_2(%arg0: i32, %arg1: memref<16xi32, #tpu.memory_space<smem>>) -> (i32, i32) {
    %c0_i32 = arith.constant 0 : i32
    %c0_i32_0 = arith.constant 0 : i32
    return %arg0, %c0_i32 : i32, i32
  }
}

</mosaic_0001>

<bundles_post_ra>
// kernel: transformer_embedding.1
= control target key start
LH: loop header
LB: loop body
LE: loop exit
PB: predicated region body
PF: predicated region fallthrough
CT: control target
= control target key end

     0   :  { %s778_s15 = smov [#allocation5]   ;;  %s1053_s0 = inlined_call_operand.vmem [shape: s32[16], index: 0, kind: input, shape index: {}]   ;;  %s1054_s1 = inlined_call_operand.vmem [shape: f32[8,512], index: 1, kind: input, shape index: {}]   ;;  %s1055_s2 = inlined_call_operand.hbm [shape: f32[100,512], index: 2, kind: input, shape index: {}]   ;;  %s1056_s3 = inlined_call_operand.hbm [shape: f32[16,512], index: 3, kind: output, shape index: {}]  }
   0x1   :  { %s9_s14 = sshll.u32 %s1053_s0, 4  ;;  %s10_s14 = int_to_ptr.vmem [resolvable:$true] %s9_s14 }
   0x2   :  { %12 = dma.vmem_to_smem %s10_s14, 16, %s778_s15, [#allocation4] }
   0x3   :  { %740 = dma.done.wait [#allocation4], 16 }
   0x4   :  { %741 = vsyncadd [#allocation4], 4294967280 }
   0x5   :  { %15 = sfence }
   0x6   :  { %16 = vsyncpa [#allocation7], 0 }
   0x7   :  { %18 = vsyncpa [#allocation7 + $0x1], 0  ;;  %s812_s16 = smov 0   ;;  %s814_s17 = smov 0  }
   0x8   :  { %s816_s18 = smov 0   ;;  %s818_s19 = smov 0  }
   0x9 LB: > { %1065 = sst [smem:[#allocation26_spill]] %s764_s16  ;;  %s833_s0 = sadd.s32 4294967295, %s776_s19   ;;  %s776_s19 = sphi %s818_s19, %s1081_s19   ;;  %s772_s18 = sphi %s816_s18, %s1083_s18   ;;  %s768_s17 = sphi %s814_s17, %s1085_s17   ;;  %s764_s16 = sphi %s812_s16, %s1084_s16  }
   0xa   : > { %1066 = sst [smem:[#allocation27_spill]] %s772_s18  ;;  %s415_s20 = sadd.s32 4294967294, %s776_s19  }
   0xb   : > { %s837_s21 = sadd.s32 1, %s776_s19   ;;  %s52_s22 = sadd.s32 1, %s772_s18 }
   0xc   : > { %1067 = sst [smem:[#allocation28_spill]] %s837_s21  ;;  %s49_s23 = ssub.s32 %s776_s19, %s837_s21 }
   0xd   : > { %p62_p0 = scmp.ne.s32.totalorder %s772_s18, %s768_s17  ;;  %p50_p1 = scmp.eq.s32.totalorder %s49_s23, 0 }
   0xe   : > { %p63_p2 = scmp.eq.s32.totalorder %s833_s0, 1  ;;  %p68_p3 = scmp.ne.s32.totalorder %s768_s17, %s764_s16 }
   0xf   : > { %p69_p4 = scmp.eq.s32.totalorder %s415_s20, 1  ;;  %p417_p7 = scmp.ge.s32.totalorder %s776_s19, 1 }
  0x10   : > { %s848_s24 = scalar_select %p50_p1, %s772_s18, %s52_s22  }
  0x11   : > { %p850_p5 = por %p63_p2, %p62_p0  ;;  %p854_p6 = por %p69_p4, %p68_p3 }
  0x12   : > { %1068 = sst [smem:[#allocation29_spill]] %s848_s24  ;;  %p90_p8 = scmp.lt.s32.totalorder %s776_s19, 3 }
  0x13   : > { %s1070_s26 = scalar_select %p854_p6, 1, 0 }
  0x14   : > { %p91_p9 = pnand %p417_p7, %p90_p8 }
  0x15   : > { %1071 = sst [smem:[#allocation30_spill]] %s1070_s26 }
  0x16   : > { %94 = sbr.rel (%p91_p9) target bundleno = 187 (0xbb), region = 24 }
  0x1b   : > { %s1057_s27 = sand.u32 1, %s768_s17   ;;  %s862_s28 = sshll.u32 %s833_s0, 3 }
  0x1c   : > { %s866_s29 = sshll.u32 %s1057_s27, 5  ;;  %s106_s30 = sld [smem:[#allocation5 + %s862_s28]] }
  0x1d   : > { %s779_s4 = smov [#allocation2]   ;;  %s120_s6 = sadd.s32 1, %s862_s28 }
  0x1e   : > { %s869_s5 = sshll.u32 %s779_s4, 4  ;;  %s873_s7 = sld [smem:[#allocation5 + %s120_s6]] }
  0x1f   : > { %1072 = sst [smem:[#allocation31_spill]] %s869_s5  ;;  %s780_s8 = smov [#allocation2 + $0x1]  }
  0x20   : > { %s875_s9 = sshll.u32 %s780_s8, 4  ;;  %s137_s14 = sadd.s32 2, %s862_s28 }
  0x21   : > { %1073 = sst [smem:[#allocation32_spill]] %s875_s9 }
  0x22   : > { %s107_s10 = sshrl.u32 %s106_s30, 3  ;;  %s108_s11 = sand.u32 7, %s106_s30  }
  0x23   : > { %s420_s12 = sshll.u32 %s107_s10, 5  ;;  %s882_s23 = sld [smem:[#allocation5 + %s137_s14]] }
  0x24   : > { %s110_s13 = sadd.s32 %s420_s12, %s108_s11  ;;  %s122_s6 = sshrl.u32 %s873_s7, 3 }
  0x25   : > { %s111_s22 = scalar_lea.hbm %s1055_s2, %s110_s13  ;;  %s888_s30 = scalar_lea.hbm %s1055_s2, 416 }
  0x26   : > { %s112_s4 = sshll.u32 %s111_s22, 4  ;;  %s113_s4 = int_to_ptr.hbm [resolvable:$true] %s112_s4 }
  0x27   : > { %s504_s27 = sshra.s32 %s113_s4, 4  ;;  %s505_s27 = int_to_ptr.hbm [resolvable:$true] %s504_s27 }
  0x28   : > { %s506_s8 = scalar_lea.hbm %s505_s27, 4  ;;  %p509_p11 = scmp.lt.s32.totalorder %s505_s27, %s1055_s2 }
  0x29   : > { %p507_p10 = scmp.ne.s32.totalorder %s505_s27, %s506_s8  ;;  %p510_p12 = scmp.lt.s32.totalorder %s888_s30, %s506_s8 }
  0x2b   : > { %p511_p13 = por %p510_p12, %p509_p11 }
  0x2d   : > { %p512_p0 = pnand %p511_p13, %p507_p10 }
  0x2f   : > { %515 = shalt.err (!%p512_p0)  }
  0x30   : > { %s781_s12 = smov 128   ;;  %s1074_s13 = sld [smem:[#allocation31_spill]] }
  0x31   : > { %s782_s14 = smov 1   ;;  %s123_s5 = sand.u32 7, %s873_s7  }
  0x32   : > { %s421_s15 = sshll.u32 %s122_s6, 5  ;;  %s783_s27 = smov [#allocation2 + $0x2]  }
  0x33   : > { %s125_s20 = sadd.s32 %s421_s15, %s123_s5  ;;  %s900_s22 = sshll.u32 %s783_s27, 4  ;;  %s149_s22 = int_to_ptr.vmem [resolvable:$true] %s900_s22 }
  0x34   : > { %s126_s11 = scalar_lea.hbm %s1055_s2, %s125_s20  ;;  %s139_s9 = sshrl.u32 %s882_s23, 3 }
  0x35   : > { %s129_s18 = sshll.u32 %s126_s11, 4  ;;  %s140_s21 = sand.u32 7, %s882_s23   ;;  %s130_s18 = int_to_ptr.hbm [resolvable:$true] %s129_s18 }
  0x36   : > { %s1075_s24 = int_to_ptr.vmem [resolvable:$true] %s1074_s13  ;;  %s422_s26 = sshll.u32 %s139_s9, 5 }
  0x37   : > { %119 = dma.hbm_to_vmem [thread:$0]  %s113_s4, 64, %s1075_s24, [#allocation3], %s781_s12, %s781_s12, %s782_s14 }
  0x38   : > { %s528_s16 = sshra.s32 %s130_s18, 4  ;;  %s529_s16 = int_to_ptr.hbm [resolvable:$true] %s528_s16 }
  0x39   : > { %s530_s13 = scalar_lea.hbm %s529_s16, 4  ;;  %p533_p2 = scmp.lt.s32.totalorder %s529_s16, %s1055_s2 }
  0x3a   : > { %p531_p1 = scmp.ne.s32.totalorder %s529_s16, %s530_s13  ;;  %p534_p3 = scmp.lt.s32.totalorder %s888_s30, %s530_s13 }
  0x3c   : > { %p535_p4 = por %p534_p3, %p533_p2 }
  0x3e   : > { %p536_p7 = pnand %p535_p4, %p531_p1 }
  0x40   : > { %539 = shalt.err (!%p536_p7)  }
  0x41   : > { %s1076_s6 = sld [smem:[#allocation32_spill]]  ;;  %s142_s9 = sadd.s32 %s422_s26, %s140_s21 }
  0x42   : > { %s143_s15 = scalar_lea.hbm %s1055_s2, %s142_s9  ;;  %s154_s16 = sadd.s32 3, %s862_s28 }
  0x43   : > { %s146_s20 = sshll.u32 %s143_s15, 4  ;;  %s155_s27 = sld [smem:[#allocation5 + %s154_s16]]  ;;  %s147_s20 = int_to_ptr.hbm [resolvable:$true] %s146_s20 }
  0x44   : > { %s552_s8 = sshra.s32 %s147_s20, 4  ;;  %s553_s8 = int_to_ptr.hbm [resolvable:$true] %s552_s8 }
  0x45   : > { %s554_s10 = scalar_lea.hbm %s553_s8, 4  ;;  %p557_p9 = scmp.lt.s32.totalorder %s553_s8, %s1055_s2 }
  0x46   : > { %p555_p8 = scmp.ne.s32.totalorder %s553_s8, %s554_s10  ;;  %p558_p10 = scmp.lt.s32.totalorder %s888_s30, %s554_s10 }
  0x47   : > { %s1077_s24 = int_to_ptr.vmem [resolvable:$true] %s1076_s6 }
  0x48   : > { %136 = dma.hbm_to_vmem [thread:$0]  %s130_s18, 64, %s1077_s24, [#allocation3 + $0x1], %s781_s12, %s781_s12, %s782_s14 }
  0x49   : > { %p559_p11 = por %p558_p10, %p557_p9 }
  0x4b   : > { %p560_p12 = pnand %p559_p11, %p555_p8 }
  0x4d   : > { %563 = shalt.err (!%p560_p12)  }
  0x4e   : > { %153 = dma.hbm_to_vmem [thread:$0]  %s147_s20, 64, %s149_s22, [#allocation3 + $0x2], %s781_s12, %s781_s12, %s782_s14 }
  0x4f   : > { %s784_s18 = smov [#allocation2 + $0x3]   ;;  %s171_s26 = sadd.s32 4, %s862_s28 }
  0x50   : > { %s928_s21 = sshll.u32 %s784_s18, 4  ;;  %s172_s7 = sld [smem:[#allocation5 + %s171_s26]]  ;;  %s166_s21 = int_to_ptr.vmem [resolvable:$true] %s928_s21 }
  0x51   : > { %s188_s4 = sadd.s32 5, %s862_s28  ;;  %s156_s6 = sshrl.u32 %s155_s27, 3 }
  0x52   : > { %s157_s24 = sand.u32 7, %s155_s27   ;;  %s423_s9 = sshll.u32 %s156_s6, 5 }
  0x53   : > { %s785_s23 = smov [#allocation2 + $0x4]   ;;  %s159_s15 = sadd.s32 %s423_s9, %s157_s24 }
  0x54   : > { %s933_s5 = sshll.u32 %s785_s23, 4  ;;  %s160_s20 = scalar_lea.hbm %s1055_s2, %s159_s15  ;;  %s183_s5 = int_to_ptr.vmem [resolvable:$true] %s933_s5 }
  0x55   : > { %s939_s8 = sld [smem:[#allocation5 + %s188_s4]]  ;;  %s163_s10 = sshll.u32 %s160_s20, 4  ;;  %s164_s10 = int_to_ptr.hbm [resolvable:$true] %s163_s10 }
  0x56   : > { %s173_s11 = sshrl.u32 %s172_s7, 3  ;;  %s174_s13 = sand.u32 7, %s172_s7  }
  0x57   : > { %s576_s18 = sshra.s32 %s164_s10, 4  ;;  %s577_s18 = int_to_ptr.hbm [resolvable:$true] %s576_s18 }
  0x58   : > { %s578_s27 = scalar_lea.hbm %s577_s18, 4  ;;  %p581_p0 = scmp.lt.s32.totalorder %s577_s18, %s1055_s2 }
  0x59   : > { %p579_p13 = scmp.ne.s32.totalorder %s577_s18, %s578_s27  ;;  %p582_p1 = scmp.lt.s32.totalorder %s888_s30, %s578_s27 }
  0x5b   : > { %p583_p2 = por %p582_p1, %p581_p0 }
  0x5d   : > { %p584_p3 = pnand %p583_p2, %p579_p13 }
  0x5f   : > { %587 = shalt.err (!%p584_p3)  }
  0x60   : > { %170 = dma.hbm_to_vmem [thread:$0]  %s164_s10, 64, %s166_s21, [#allocation3 + $0x3], %s781_s12, %s781_s12, %s782_s14 }
  0x61   : > { %s424_s7 = sshll.u32 %s173_s11, 5  ;;  %s786_s24 = smov [#allocation2 + $0x5]  }
  0x62   : > { %s176_s4 = sadd.s32 %s424_s7, %s174_s13  ;;  %s948_s9 = sshll.u32 %s786_s24, 4  ;;  %s200_s9 = int_to_ptr.vmem [resolvable:$true] %s948_s9 }
  0x63   : > { %s177_s16 = scalar_lea.hbm %s1055_s2, %s176_s4  ;;  %s190_s22 = sshrl.u32 %s939_s8, 3 }
  0x64   : > { %s180_s20 = sshll.u32 %s177_s16, 4  ;;  %s191_s18 = sand.u32 7, %s939_s8   ;;  %s181_s20 = int_to_ptr.hbm [resolvable:$true] %s180_s20 }
  0x65   : > { %s425_s27 = sshll.u32 %s190_s22, 5  ;;  %s600_s26 = sshra.s32 %s181_s20, 4  ;;  %s601_s26 = int_to_ptr.hbm [resolvable:$true] %s600_s26 }
  0x66   : > { %s602_s6 = scalar_lea.hbm %s601_s26, 4  ;;  %p605_p7 = scmp.lt.s32.totalorder %s601_s26, %s1055_s2 }
  0x67   : > { %p603_p4 = scmp.ne.s32.totalorder %s601_s26, %s602_s6  ;;  %p606_p8 = scmp.lt.s32.totalorder %s888_s30, %s602_s6 }
  0x69   : > { %p607_p9 = por %p606_p8, %p605_p7 }
  0x6b   : > { %p608_p10 = pnand %p607_p9, %p603_p4 }
  0x6d   : > { %611 = shalt.err (!%p608_p10)  }
  0x6e   : > { %187 = dma.hbm_to_vmem [thread:$0]  %s181_s20, 64, %s183_s5, [#allocation3 + $0x4], %s781_s12, %s781_s12, %s782_s14 }
  0x6f   : > { %s193_s8 = sadd.s32 %s425_s27, %s191_s18  ;;  %s205_s4 = sadd.s32 6, %s862_s28 }
  0x70   : > { %s194_s7 = scalar_lea.hbm %s1055_s2, %s193_s8  ;;  %s206_s23 = sld [smem:[#allocation5 + %s205_s4]] }
  0x71   : > { %s197_s24 = sshll.u32 %s194_s7, 4  ;;  %s198_s24 = int_to_ptr.hbm [resolvable:$true] %s197_s24 }
  0x72   : > { %s624_s15 = sshra.s32 %s198_s24, 4  ;;  %s625_s15 = int_to_ptr.hbm [resolvable:$true] %s624_s15 }
  0x73   : > { %s626_s16 = scalar_lea.hbm %s625_s15, 4  ;;  %p629_p12 = scmp.lt.s32.totalorder %s625_s15, %s1055_s2 }
  0x74   : > { %p627_p11 = scmp.ne.s32.totalorder %s625_s15, %s626_s16  ;;  %p630_p13 = scmp.lt.s32.totalorder %s888_s30, %s626_s16 }
  0x76   : > { %p631_p0 = por %p630_p13, %p629_p12 }
  0x78   : > { %p632_p1 = pnand %p631_p0, %p627_p11 }
  0x7a   : > { %635 = shalt.err (!%p632_p1)  }
  0x7b   : > { %204 = dma.hbm_to_vmem [thread:$0]  %s198_s24, 64, %s200_s9, [#allocation3 + $0x5], %s781_s12, %s781_s12, %s782_s14 }
  0x7c   : > { %s222_s5 = sadd.s32 7, %s862_s28  ;;  %s787_s18 = smov [#allocation2 + $0x6]  }
  0x7d   : > { %s223_s20 = sld [smem:[#allocation5 + %s222_s5]]  ;;  %s216_s27 = sshll.u32 %s787_s18, 4  ;;  %s217_s27 = int_to_ptr.vmem [resolvable:$true] %s216_s27 }
  0x7e   : > { %s207_s6 = sshrl.u32 %s206_s23, 3  ;;  %s208_s21 = sand.u32 7, %s206_s23  }
  0x7f   : > { %s426_s10 = sshll.u32 %s207_s6, 5  ;;  %s788_s4 = smov [#allocation2 + $0x7]  }
  0x80   : > { %s210_s8 = sadd.s32 %s426_s10, %s208_s21  ;;  %s980_s15 = sshll.u32 %s788_s4, 4  ;;  %s234_s15 = int_to_ptr.vmem [resolvable:$true] %s980_s15 }
  0x81   : > { %s211_s7 = scalar_lea.hbm %s1055_s2, %s210_s8 }
  0x82   : > { %s214_s16 = sshll.u32 %s211_s7, 4  ;;  %s215_s16 = int_to_ptr.hbm [resolvable:$true] %s214_s16 }
  0x83   : > { %s224_s22 = sshrl.u32 %s223_s20, 3  ;;  %s225_s28 = sand.u32 7, %s223_s20  }
  0x84   : > { %s648_s9 = sshra.s32 %s215_s16, 4  ;;  %s649_s9 = int_to_ptr.hbm [resolvable:$true] %s648_s9 }
  0x85   : > { %s650_s24 = scalar_lea.hbm %s649_s9, 4  ;;  %p653_p3 = scmp.lt.s32.totalorder %s649_s9, %s1055_s2 }
  0x86   : > { %p651_p2 = scmp.ne.s32.totalorder %s649_s9, %s650_s24  ;;  %p654_p4 = scmp.lt.s32.totalorder %s888_s30, %s650_s24 }
  0x88   : > { %p655_p7 = por %p654_p4, %p653_p3 }
  0x8a   : > { %p656_p8 = pnand %p655_p7, %p651_p2 }
  0x8c   : > { %659 = shalt.err (!%p656_p8)  }
  0x8d   : > { %221 = dma.hbm_to_vmem [thread:$0]  %s215_s16, 64, %s217_s27, [#allocation3 + $0x6], %s781_s12, %s781_s12, %s782_s14 }
  0x8e   : > { %s427_s5 = sshll.u32 %s224_s22, 5 }
  0x8f   : > { %s227_s20 = sadd.s32 %s427_s5, %s225_s28 }
  0x90   : > { %s228_s21 = scalar_lea.hbm %s1055_s2, %s227_s20 }
  0x91   : > { %s231_s10 = sshll.u32 %s228_s21, 4  ;;  %s232_s10 = int_to_ptr.hbm [resolvable:$true] %s231_s10 }
  0x92   : > { %s672_s8 = sshra.s32 %s232_s10, 4  ;;  %s673_s8 = int_to_ptr.hbm [resolvable:$true] %s672_s8 }
  0x93   : > { %s674_s11 = scalar_lea.hbm %s673_s8, 4  ;;  %p677_p10 = scmp.lt.s32.totalorder %s673_s8, %s1055_s2 }
  0x94   : > { %p675_p9 = scmp.ne.s32.totalorder %s673_s8, %s674_s11  ;;  %p678_p11 = scmp.lt.s32.totalorder %s888_s30, %s674_s11 }
  0x96   : > { %p679_p12 = por %p678_p11, %p677_p10 }
  0x98   : > { %p680_p13 = pnand %p679_p12, %p675_p9 }
  0x9a   : > { %683 = shalt.err (!%p680_p13)  }
  0x9b   : > { %238 = dma.hbm_to_vmem [thread:$0]  %s232_s10, 64, %s234_s15, [#allocation3 + $0x7], %s781_s12, %s781_s12, %s782_s14 }
  0x9c   : > { %s1001_s27 = scalar_lea.vmem [#allocation6], %s866_s29 }
  0x9d   : > { %742 = dma.done.wait [#allocation3], 64 }
  0x9e   : > { %743 = vsyncadd [#allocation3], 4294967232 }
  0x9f   : > { %744 = dma.done.wait [#allocation3 + $0x1], 64 }
  0xa0   : > { %745 = vsyncadd [#allocation3 + $0x1], 4294967232 }
  0xa1   : > { %746 = dma.done.wait [#allocation3 + $0x2], 64 }
  0xa2   : > { %747 = vsyncadd [#allocation3 + $0x2], 4294967232 }
  0xa3   : > { %748 = dma.done.wait [#allocation3 + $0x3], 64 }
  0xa4   : > { %749 = vsyncadd [#allocation3 + $0x3], 4294967232 }
  0xa5   : > { %750 = dma.done.wait [#allocation3 + $0x4], 64 }
  0xa6   : > { %751 = vsyncadd [#allocation3 + $0x4], 4294967232 }
  0xa7   : > { %752 = dma.done.wait [#allocation3 + $0x5], 64 }
  0xa8   : > { %753 = vsyncadd [#allocation3 + $0x5], 4294967232 }
  0xa9   : > { %754 = dma.done.wait [#allocation3 + $0x6], 64 }
  0xaa   : > { %755 = vsyncadd [#allocation3 + $0x6], 4294967232 }
  0xab   : > { %756 = dma.done.wait [#allocation3 + $0x7], 64 }
  0xac   : > { %757 = vsyncadd [#allocation3 + $0x7], 4294967232  ;;  %s441_s29 = sshll.u32 %s833_s0, 5  ;;  %v256_v0 = vld [vmem:[#allocation2] sm:$0xff]  ;;  %v257_v2 = vld [vmem:[#allocation2 + $0x8] sm:$0xff]  ;;  %s286_s9 = sshll.u32 %s1001_s27, 4  ;;  %s287_s9 = int_to_ptr.vmem [resolvable:$true] %s286_s9 }
  0xad   : > { %s284_s14 = scalar_lea.hbm %s1056_s3, %s441_s29  ;;  %v260_v1 = vld [vmem:[%s1054_s1] sm:$0xff]  ;;  %v261_v4 = vld [vmem:[%s1054_s1 + $0x8] sm:$0xff]  ;;  %v258_v5 = vld [vmem:[#allocation2 + $0x10] sm:$0xff]  ;;  %s1078_s5 = sand.u32 1, %s768_s17  }
  0xae   : > { %v264_v3 = vadd.f32 %v260_v1, %v256_v0  ;;  %v262_v6 = vld [vmem:[%s1054_s1 + $0x10] sm:$0xff]  ;;  %s288_s24 = sshll.u32 %s284_s14, 4  ;;  %v265_v7 = vadd.f32 %v261_v4, %v257_v2  ;;  %v259_v9 = vld [vmem:[#allocation2 + $0x18] sm:$0xff]  ;;  %s273_s20 = scalar_lea.sflag [#allocation7], %s1078_s5  ;;  %s289_s24 = int_to_ptr.hbm [resolvable:$true] %s288_s24 }
  0xaf   : > { %v266_v8 = vadd.f32 %v262_v6, %v258_v5  ;;  %v263_v10 = vld [vmem:[%s1054_s1 + $0x18] sm:$0xff]  ;;  %s710_s18 = sshra.s32 %s289_s24, 4  ;;  %s716_s8 = scalar_lea.hbm %s1056_s3, 64  ;;  %s711_s18 = int_to_ptr.hbm [resolvable:$true] %s710_s18 }
  0xb0   : > { %268 = vst [vmem:[%s1001_s27] sm:$0xff] %v264_v3  ;;  %v267_v11 = vadd.f32 %v263_v10, %v259_v9  ;;  %s712_s6 = scalar_lea.hbm %s711_s18, 32  ;;  %p717_p3 = scmp.lt.s32.totalorder %s711_s18, %s1056_s3 }
  0xb1   : > { %269 = vst [vmem:[%s1001_s27 + $0x8] sm:$0xff] %v265_v7  ;;  %p713_p0 = scmp.ne.s32.totalorder %s711_s18, %s712_s6  ;;  %p718_p4 = scmp.lt.s32.totalorder %s716_s8, %s712_s6 }
  0xb2   : > { %270 = vst [vmem:[%s1001_s27 + $0x10] sm:$0xff] %v266_v8 }
  0xb3   : > { %271 = vst [vmem:[%s1001_s27 + $0x18] sm:$0xff] %v267_v11  ;;  %p714_p1 = pnand %p713_p0, %p850_p5  ;;  %p719_p7 = por %p718_p4, %p717_p3 }
  0xb5   : > { %p715_p2 = pneg %p714_p1 }
  0xb7   : > { %p720_p8 = pnand %p719_p7, %p715_p2 }
  0xb9   : > { %723 = shalt.err (!%p720_p8)
}
  0xba   : > { %442 = dma.vmem_to_hbm [thread:$0]  (%p850_p5), %s287_s9, 512, %s289_s24, %s273_s20  }
  0xbb PF: > { %s1079_s7 = sld [smem:[#allocation26_spill]]  ;;  %p448_p9 = scmp.ge.s32.totalorder %s776_s19, 2 }
  0xbd   : > { %p445_p10 = pnand %p448_p9, %p854_p6 }
  0xbf   : > { %p446_p11 = pneg %p445_p10 }
  0xc1   : > { %s300_s29 = sand.u32 1, %s1079_s7  }
  0xc2   : > { %s301_s30 = scalar_lea.sflag [#allocation7], %s300_s29 }
  0xc3   : > { %759 = dma.done.wait (%p446_p11), %s301_s30, 512  }
  0xc4   : > { %761 = vsyncadd (%p446_p11), %s301_s30, 4294966784  ;;  %s1081_s19 = sld [smem:[#allocation28_spill]]  ;;  %s1084_s16 = smov %s768_s17 }
  0xc5   : > { %s1082_s12 = sld [smem:[#allocation27_spill]] }
  0xc6   : > { %s1083_s18 = sld [smem:[#allocation29_spill]] }
  0xca   : > { %p21_p12 = scmp.ge.s32.totalorder %s1081_s19, 4  }
  0xcb   : > { %s1085_s17 = smov %s1082_s12 }
  0xcc   :  { %23 = sbr.rel (!%p21_p12) target bundleno = 9 (0x9), region = 85 }
  0xd1   :  { %307 = vsyncpa [#allocation7], 1 }
  0xd2   :  { %309 = vsyncpa [#allocation7 + $0x1], 1 }
  0xd3   :  { %310 = vsyncmov [#allocation3] }
  0xd6   :  { %s311_s25 = vpop.sfrf %310 }
  0xd7   :  { %p433_p5 = scmp.ne.s32.totalorder %s311_s25, 0 }
  0xd9   :  { %315 = shalt.err (%p433_p5)  }
  0xda   :  { %317 = vsyncmov [#allocation3 + $0x1] }
  0xdd   :  { %s318_s14 = vpop.sfrf %317 }
  0xde   :  { %p434_p6 = scmp.ne.s32.totalorder %s318_s14, 0 }
  0xe0   :  { %322 = shalt.err (%p434_p6)  }
  0xe1   :  { %324 = vsyncmov [#allocation3 + $0x2] }
  0xe4   :  { %s325_s4 = vpop.sfrf %324 }
  0xe5   :  { %p435_p13 = scmp.ne.s32.totalorder %s325_s4, 0 }
  0xe7   :  { %329 = shalt.err (%p435_p13)  }
  0xe8   :  { %331 = vsyncmov [#allocation3 + $0x3] }
  0xeb   :  { %s332_s15 = vpop.sfrf %331 }
  0xec   :  { %p436_p0 = scmp.ne.s32.totalorder %s332_s15, 0 }
  0xee   :  { %336 = shalt.err (%p436_p0)  }
  0xef   :  { %338 = vsyncmov [#allocation3 + $0x4] }
  0xf2   :  { %s339_s19 = vpop.sfrf %338 }
  0xf3   :  { %p437_p1 = scmp.ne.s32.totalorder %s339_s19, 0 }
  0xf5   :  { %343 = shalt.err (%p437_p1)  }
  0xf6   :  { %345 = vsyncmov [#allocation3 + $0x5] }
  0xf9   :  { %s346_s1 = vpop.sfrf %345 }
  0xfa   :  { %p438_p2 = scmp.ne.s32.totalorder %s346_s1, 0 }
  0xfc   :  { %350 = shalt.err (%p438_p2)  }
  0xfd   :  { %352 = vsyncmov [#allocation3 + $0x6] }
 0x100   :  { %s353_s2 = vpop.sfrf %352 }
 0x101   :  { %p439_p3 = scmp.ne.s32.totalorder %s353_s2, 0 }
 0x103   :  { %357 = shalt.err (%p439_p3)  }
 0x104   :  { %359 = vsyncmov [#allocation3 + $0x7] }
 0x107   :  { %s360_s3 = vpop.sfrf %359 }
 0x108   :  { %p440_p4 = scmp.ne.s32.totalorder %s360_s3, 0 }
 0x10a   :  { %364 = shalt.err (%p440_p4)  }

</bundles_post_ra>
